<compile_context>
chip_gen: v6e
topology: v6e:2x2x1
jax: 0.10.0
libtpu: 0.0.40
codegen_flags: <defaults>
</compile_context>

<pallas_src>
import functools

import jax
import jax.numpy as jnp
from jax import lax
from jax.experimental import pallas as pl
from jax.experimental.pallas import tpu as pltpu


def _round_up(a, b):
    return (a + b - 1) // b * b


# ---------------------------------------------------------------------------
# Top-k sparsification kernel (last dim > 256)
# ---------------------------------------------------------------------------
def _row_count(mask, d_pad):
    """Per-row count of True in an (R, d_pad) mask -> (R, 1) float32.

    Lane chunks are folded with VPU adds first; only the final (R, 128)
    partial hits the XLU lane reduce.
    """
    xf = mask.astype(jnp.float32)
    n_chunks = d_pad // 128
    if n_chunks <= 64:
        acc = xf[:, 0:128]
        for c in range(1, n_chunks):
            acc = acc + xf[:, 128 * c:128 * (c + 1)]
        return jnp.sum(acc, axis=-1, keepdims=True)
    return jnp.sum(xf, axis=-1, keepdims=True)


def _topk_kernel(x_ref, o_ref, *, k, d_pad, is_float):
    """Grid = (row_blocks,).  Block = (R, d_pad), full rows resident in VMEM.

    Exact per-row top-k via bit bisection on a monotone int32 key:
      1) decide the sign of the k-th largest value (1 count),
      2) 31 greedy bit decisions on the low 31 key bits (1 count each),
      3) tie resolution: bisection on the index axis so that exactly
         (k - #strictly_greater) of the tied values (lowest indices) are kept.
    """
    xv = x_ref[...]

    if is_float:
        xf = xv.astype(jnp.float32)
        bits = pltpu.bitcast(xf, jnp.int32)
        # monotone signed key: negatives get their low 31 bits flipped
        key = jnp.where(bits < 0, bits ^ jnp.int32(0x7FFFFFFF), bits)
        key = jnp.where(xf == 0.0, jnp.int32(0), key)      # canonicalize +-0
    else:
        key = xv.astype(jnp.int32)

    kf = jnp.float32(k)

    # ---- sign decision (bit 31 of the unsigned-order key) -----------------
    cnt_nonneg = _row_count(key >= 0, d_pad)               # (R, 1) f32
    thr_nonneg = cnt_nonneg >= kf                          # (R, 1) bool

    # 31-bit search key in [-1, 2^31 - 1]; signed compares are safe.
    skey = jnp.where(
        thr_nonneg,
        jnp.where(key >= 0, key, jnp.int32(-1)),
        jnp.where(key >= 0, jnp.int32(0x7FFFFFFF),
                  key & jnp.int32(0x7FFFFFFF)))

    r0 = jnp.zeros_like(key[:, :1])                        # (R, 1) int32

    # ---- greedy MSB-first search for the k-th largest key ------------------
    def bit_body(_, carry):
        r, bit = carry
        cand = r | bit
        cnt = _row_count(skey >= cand, d_pad)
        r = jnp.where(cnt >= kf, cand, r)
        return r, lax.shift_right_logical(bit, jnp.int32(1))

    r, _ = lax.fori_loop(0, 31, bit_body, (r0, jnp.int32(1 << 30)))

    t_key = jnp.where(thr_nonneg, r, r | jnp.int32(-2147483648))

    gt = key > t_key
    eq = key == t_key
    cnt_gt = _row_count(gt, d_pad)
    need = kf - cnt_gt                                     # in [1, k]

    # ---- tie break: keep the `need` lowest-index elements equal to t_key ---
    idx = lax.broadcasted_iota(jnp.int32, (1, d_pad), 1)
    nbits = max(int(d_pad - 1).bit_length(), 1)

    def idx_body(_, carry):
        m, bit = carry
        cand = m | bit
        cnt = _row_count(eq & (idx <= cand), d_pad)
        m = jnp.where(cnt <= need, cand, m)
        return m, lax.shift_right_logical(bit, jnp.int32(1))

    m, _ = lax.fori_loop(0, nbits, idx_body,
                         (r0, jnp.int32(1 << (nbits - 1))))

    keep = gt | (eq & (idx <= m))
    o_ref[...] = jnp.where(keep, xv, jnp.zeros_like(xv))


_TARGET_BLOCK_ELEMS = 128 * 512     # ~256 KiB f32 per (R, d_pad) array


def _topk_sparsify(x):
    d = x.shape[-1]
    k = max(d // 8, 1)
    orig_shape, dtype = x.shape, x.dtype

    x2 = x.reshape(-1, d)
    n = x2.shape[0]
    d_pad = _round_up(d, 128)

    # rows per block: keep the block ~_TARGET_BLOCK_ELEMS elements
    r = (_TARGET_BLOCK_ELEMS // d_pad) // 8 * 8
    r = max(8, min(256, r))
    r = min(r, _round_up(n, 8))
    n_pad = _round_up(n, r)

    if jnp.issubdtype(dtype, jnp.floating):
        pad_val = float("-inf")          # padded lanes never outrank real data
        is_float = True
    elif jnp.issubdtype(dtype, jnp.integer):
        pad_val = int(jnp.iinfo(dtype).min)
        is_float = False
    else:
        pad_val = 0
        is_float = False
    if n_pad != n or d_pad != d:
        x2 = jnp.pad(x2, ((0, n_pad - n), (0, d_pad - d)),
                     constant_values=pad_val)

    kernel = functools.partial(_topk_kernel, k=k, d_pad=d_pad,
                               is_float=is_float)
    out = pl.pallas_call(
        kernel,
        out_shape=jax.ShapeDtypeStruct((n_pad, d_pad), dtype),
        grid=(n_pad // r,),
        in_specs=[pl.BlockSpec((r, d_pad), lambda i: (i, 0))],
        out_specs=pl.BlockSpec((r, d_pad), lambda i: (i, 0)),
        compiler_params=pltpu.CompilerParams(
            dimension_semantics=("parallel",),
            vmem_limit_bytes=32 * 1024 * 1024),
    )(x2)

    if n_pad != n or d_pad != d:
        out = out[:n, :d]
    return out.reshape(orig_shape)


# ---------------------------------------------------------------------------
# ReLU branch (last dim <= 256): lane-dense tiled elementwise kernel
# ---------------------------------------------------------------------------
def _relu_kernel(x_ref, o_ref):
    xv = x_ref[...]
    o_ref[...] = jnp.maximum(xv, jnp.zeros_like(xv))


def _relu(x):
    orig_shape, dtype = x.shape, x.dtype
    flat = x.reshape(-1)
    t = flat.shape[0]
    lanes = 1024
    rows = -(-t // lanes)
    br = 512 if rows >= 512 else rows            # rows per block
    rows_pad = _round_up(rows, br)
    pad = rows_pad * lanes - t
    if pad:
        flat = jnp.pad(flat, (0, pad))
    x2 = flat.reshape(rows_pad, lanes)

    out = pl.pallas_call(
        _relu_kernel,
        out_shape=jax.ShapeDtypeStruct((rows_pad, lanes), dtype),
        grid=(rows_pad // br,),
        in_specs=[pl.BlockSpec((br, lanes), lambda i: (i, 0))],
        out_specs=pl.BlockSpec((br, lanes), lambda i: (i, 0)),
        compiler_params=pltpu.CompilerParams(
            dimension_semantics=("parallel",)),
    )(x2)
    return out.reshape(-1)[:t].reshape(orig_shape)


# ---------------------------------------------------------------------------
# Public entry point (forward of TopkReLU)
# ---------------------------------------------------------------------------
def topk_relu(x):
    if x.shape[-1] > 256:
        return _topk_sparsify(x)
    return _relu(x)


# ---------------------------------------------------------------------------
# Pure-JAX reference (for correctness checking only)
# ---------------------------------------------------------------------------
def _ref_topk_relu(x):
    d = x.shape[-1]
    if d > 256:
        k = max(d // 8, 1)
        vals, idx = jax.lax.top_k(x, k)
        return jnp.put_along_axis(jnp.zeros_like(x), idx, vals, axis=-1,
                                  inplace=False)
    return jnp.maximum(x, 0)


if __name__ == "__main__":
    key = jax.random.PRNGKey(0)
    k1, k2, k3 = jax.random.split(key, 3)

    # top-k branch, lane-aligned last dim: k = 512 // 8 = 64
    x_big = jax.random.normal(k1, (2, 4, 512), dtype=jnp.float32)
    y_big = jax.block_until_ready(topk_relu(x_big))
    ref_big = _ref_topk_relu(x_big)

    # top-k branch, non-multiple-of-128 last dim (exercises -inf padding):
    # k = 300 // 8 = 37
    x_mid = jax.random.normal(k3, (3, 4, 300), dtype=jnp.float32)
    y_mid = jax.block_until_ready(topk_relu(x_mid))
    ref_mid = _ref_topk_relu(x_mid)

    # relu branch (last dim <= 256)
    x_small = jax.random.normal(k2, (2, 4, 32), dtype=jnp.float32)
    y_small = jax.block_until_ready(topk_relu(x_small))
    ref_small = _ref_topk_relu(x_small)

    assert y_big.shape == x_big.shape and y_big.dtype == x_big.dtype
    assert y_mid.shape == x_mid.shape and y_mid.dtype == x_mid.dtype
    assert y_small.shape == x_small.shape and y_small.dtype == x_small.dtype
    assert jnp.allclose(y_big, ref_big, atol=1e-6)
    assert jnp.allclose(y_mid, ref_mid, atol=1e-6)
    assert jnp.allclose(y_small, ref_small, atol=1e-6)
    # each row of the top-k outputs keeps exactly k nonzeros (prob. 1 for floats)
    assert bool(jnp.all(jnp.sum(y_big != 0, axis=-1) == 64))
    assert bool(jnp.all(jnp.sum(y_mid != 0, axis=-1) == 37))

    print("KERNEL_OK")
</pallas_src>

<mosaic_0001>
module attributes {stable_mosaic.version = 11 : i64} {
  func.func @_topk_kernel(%arg0: i32, %arg1: memref<8x512xf32, #tpu.memory_space<vmem>>, %arg2: memref<8x512xf32, #tpu.memory_space<vmem>>) attributes {dimension_semantics = [#tpu.dimension_semantics<parallel>], iteration_bounds = array<i64: 1>, scalar_prefetch = 0 : i64, scratch_operands = 0 : i64, tpu.core_type = #tpu.core_type<tc>, window_params = [{transform_indices = @transform_0, window_bounds = array<i64: 8, 512>}, {transform_indices = @transform_1, window_bounds = array<i64: 8, 512>}]} {
    %c0 = arith.constant 0 : index
    %c0_0 = arith.constant 0 : index
    %0 = vector.load %arg1[%c0, %c0_0] : memref<8x512xf32, #tpu.memory_space<vmem>>, vector<8x512xf32>
    %1 = tpu.bitcast %0 : vector<8x512xf32> -> vector<8x512xi32>
    %c0_i32 = arith.constant 0 : i32
    %2 = vector.broadcast %c0_i32 : i32 to vector<8x512xi32>
    %3 = arith.cmpi slt, %1, %2 : vector<8x512xi32>
    %c2147483647_i32 = arith.constant 2147483647 : i32
    %4 = vector.broadcast %c2147483647_i32 : i32 to vector<8x512xi32>
    %5 = arith.xori %1, %4 : vector<8x512xi32>
    %6 = arith.select %3, %5, %1 : vector<8x512xi1>, vector<8x512xi32>
    %cst = arith.constant 0.000000e+00 : f32
    %7 = vector.broadcast %cst : f32 to vector<8x512xf32>
    %8 = arith.cmpf oeq, %0, %7 : vector<8x512xf32>
    %c0_i32_1 = arith.constant 0 : i32
    %9 = vector.broadcast %c0_i32_1 : i32 to vector<8x512xi32>
    %10 = arith.select %8, %9, %6 : vector<8x512xi1>, vector<8x512xi32>
    %c0_i32_2 = arith.constant 0 : i32
    %11 = vector.broadcast %c0_i32_2 : i32 to vector<8x512xi32>
    %12 = arith.cmpi sge, %10, %11 : vector<8x512xi32>
    %13 = arith.extui %12 : vector<8x512xi1> to vector<8x512xi32>
    %14 = arith.sitofp %13 : vector<8x512xi32> to vector<8x512xf32>
    %15 = vector.extract_strided_slice %14 {offsets = [0, 0], sizes = [8, 128], strides = [1, 1]} : vector<8x512xf32> to vector<8x128xf32>
    %16 = vector.extract_strided_slice %14 {offsets = [0, 128], sizes = [8, 128], strides = [1, 1]} : vector<8x512xf32> to vector<8x128xf32>
    %17 = arith.addf %15, %16 : vector<8x128xf32>
    %18 = vector.extract_strided_slice %14 {offsets = [0, 256], sizes = [8, 128], strides = [1, 1]} : vector<8x512xf32> to vector<8x128xf32>
    %19 = arith.addf %17, %18 : vector<8x128xf32>
    %20 = vector.extract_strided_slice %14 {offsets = [0, 384], sizes = [8, 128], strides = [1, 1]} : vector<8x512xf32> to vector<8x128xf32>
    %21 = arith.addf %19, %20 : vector<8x128xf32>
    %cst_3 = arith.constant dense<0.000000e+00> : vector<8xf32>
    %22 = vector.multi_reduction <add>, %21, %cst_3 [1] : vector<8x128xf32> to vector<8xf32>
    %23 = vector.shape_cast %22 : vector<8xf32> to vector<8x1xf32>
    %cst_4 = arith.constant 6.400000e+01 : f32
    %24 = vector.broadcast %cst_4 : f32 to vector<8x1xf32>
    %25 = arith.cmpf oge, %23, %24 : vector<8x1xf32>
    %c0_i32_5 = arith.constant 0 : i32
    %26 = vector.broadcast %c0_i32_5 : i32 to vector<8x512xi32>
    %27 = arith.cmpi sge, %10, %26 : vector<8x512xi32>
    %c-1_i32 = arith.constant -1 : i32
    %28 = vector.broadcast %c-1_i32 : i32 to vector<8x512xi32>
    %29 = arith.select %27, %10, %28 : vector<8x512xi1>, vector<8x512xi32>
    %c0_i32_6 = arith.constant 0 : i32
    %30 = vector.broadcast %c0_i32_6 : i32 to vector<8x512xi32>
    %31 = arith.cmpi sge, %10, %30 : vector<8x512xi32>
    %c2147483647_i32_7 = arith.constant 2147483647 : i32
    %32 = vector.broadcast %c2147483647_i32_7 : i32 to vector<8x512xi32>
    %33 = arith.andi %10, %32 : vector<8x512xi32>
    %c2147483647_i32_8 = arith.constant 2147483647 : i32
    %34 = vector.broadcast %c2147483647_i32_8 : i32 to vector<8x512xi32>
    %35 = arith.select %31, %34, %33 : vector<8x512xi1>, vector<8x512xi32>
    %36 = vector.shape_cast %25 : vector<8x1xi1> to vector<8x1xi1>
    %37 = vector.broadcast %36 : vector<8x1xi1> to vector<8x512xi1>
    %38 = arith.select %37, %29, %35 : vector<8x512xi1>, vector<8x512xi32>
    %c0_i32_9 = arith.constant 0 : i32
    %39 = vector.broadcast %c0_i32_9 : i32 to vector<8x1xi32>
    %cst_10 = arith.constant 6.400000e+01 : f32
    %c1073741824_i32 = arith.constant 1073741824 : i32
    %c0_i32_11 = arith.constant 0 : i32
    %c31_i32 = arith.constant 31 : i32
    %40 = arith.addi %c0_i32_11, %c31_i32 : i32
    %c1_i32 = arith.constant 1 : i32
    %41:2 = scf.for %arg3 = %c0_i32_11 to %40 step %c1_i32 iter_args(%arg4 = %39, %arg5 = %c1073741824_i32) -> (vector<8x1xi32>, i32)  : i32 {
      %73 = vector.broadcast %arg5 : i32 to vector<8x1xi32>
      %74 = arith.ori %arg4, %73 : vector<8x1xi32>
      %75 = vector.broadcast %74 : vector<8x1xi32> to vector<8x512xi32>
      %76 = arith.cmpi sge, %38, %75 : vector<8x512xi32>
      %77 = arith.extui %76 : vector<8x512xi1> to vector<8x512xi32>
      %78 = arith.sitofp %77 : vector<8x512xi32> to vector<8x512xf32>
      %79 = vector.extract_strided_slice %78 {offsets = [0, 0], sizes = [8, 128], strides = [1, 1]} : vector<8x512xf32> to vector<8x128xf32>
      %80 = vector.extract_strided_slice %78 {offsets = [0, 128], sizes = [8, 128], strides = [1, 1]} : vector<8x512xf32> to vector<8x128xf32>
      %81 = arith.addf %79, %80 : vector<8x128xf32>
      %82 = vector.extract_strided_slice %78 {offsets = [0, 256], sizes = [8, 128], strides = [1, 1]} : vector<8x512xf32> to vector<8x128xf32>
      %83 = arith.addf %81, %82 : vector<8x128xf32>
      %84 = vector.extract_strided_slice %78 {offsets = [0, 384], sizes = [8, 128], strides = [1, 1]} : vector<8x512xf32> to vector<8x128xf32>
      %85 = arith.addf %83, %84 : vector<8x128xf32>
      %cst_19 = arith.constant dense<0.000000e+00> : vector<8xf32>
      %86 = vector.multi_reduction <add>, %85, %cst_19 [1] : vector<8x128xf32> to vector<8xf32>
      %87 = vector.shape_cast %86 : vector<8xf32> to vector<8x1xf32>
      %88 = vector.broadcast %cst_10 : f32 to vector<8x1xf32>
      %89 = arith.cmpf oge, %87, %88 : vector<8x1xf32>
      %90 = arith.select %89, %74, %arg4 : vector<8x1xi1>, vector<8x1xi32>
      %c1_i32_20 = arith.constant 1 : i32
      %91 = arith.shrui %arg5, %c1_i32_20 : i32
      scf.yield %90, %91 : vector<8x1xi32>, i32
    }
    %c-2147483648_i32 = arith.constant -2147483648 : i32
    %42 = vector.broadcast %c-2147483648_i32 : i32 to vector<8x1xi32>
    %43 = arith.ori %41#0, %42 : vector<8x1xi32>
    %44 = arith.select %25, %41#0, %43 : vector<8x1xi1>, vector<8x1xi32>
    %45 = vector.broadcast %44 : vector<8x1xi32> to vector<8x512xi32>
    %46 = arith.cmpi sgt, %10, %45 : vector<8x512xi32>
    %47 = vector.broadcast %44 : vector<8x1xi32> to vector<8x512xi32>
    %48 = arith.cmpi eq, %10, %47 : vector<8x512xi32>
    %49 = arith.extui %46 : vector<8x512xi1> to vector<8x512xi32>
    %50 = arith.sitofp %49 : vector<8x512xi32> to vector<8x512xf32>
    %51 = vector.extract_strided_slice %50 {offsets = [0, 0], sizes = [8, 128], strides = [1, 1]} : vector<8x512xf32> to vector<8x128xf32>
    %52 = vector.extract_strided_slice %50 {offsets = [0, 128], sizes = [8, 128], strides = [1, 1]} : vector<8x512xf32> to vector<8x128xf32>
    %53 = arith.addf %51, %52 : vector<8x128xf32>
    %54 = vector.extract_strided_slice %50 {offsets = [0, 256], sizes = [8, 128], strides = [1, 1]} : vector<8x512xf32> to vector<8x128xf32>
    %55 = arith.addf %53, %54 : vector<8x128xf32>
    %56 = vector.extract_strided_slice %50 {offsets = [0, 384], sizes = [8, 128], strides = [1, 1]} : vector<8x512xf32> to vector<8x128xf32>
    %57 = arith.addf %55, %56 : vector<8x128xf32>
    %cst_12 = arith.constant dense<0.000000e+00> : vector<8xf32>
    %58 = vector.multi_reduction <add>, %57, %cst_12 [1] : vector<8x128xf32> to vector<8xf32>
    %59 = vector.shape_cast %58 : vector<8xf32> to vector<8x1xf32>
    %cst_13 = arith.constant 6.400000e+01 : f32
    %60 = vector.broadcast %cst_13 : f32 to vector<8x1xf32>
    %61 = arith.subf %60, %59 : vector<8x1xf32>
    %62 = tpu.iota {dimensions = array<i32: 1>} : vector<1x512xi32>
    %c256_i32 = arith.constant 256 : i32
    %c0_i32_14 = arith.constant 0 : i32
    %c9_i32 = arith.constant 9 : i32
    %63 = arith.addi %c0_i32_14, %c9_i32 : i32
    %c1_i32_15 = arith.constant 1 : i32
    %64:2 = scf.for %arg3 = %c0_i32_14 to %63 step %c1_i32_15 iter_args(%arg4 = %39, %arg5 = %c256_i32) -> (vector<8x1xi32>, i32)  : i32 {
      %73 = vector.broadcast %arg5 : i32 to vector<8x1xi32>
      %74 = arith.ori %arg4, %73 : vector<8x1xi32>
      %75 = vector.broadcast %62 : vector<1x512xi32> to vector<8x512xi32>
      %76 = vector.broadcast %74 : vector<8x1xi32> to vector<8x512xi32>
      %77 = arith.cmpi sle, %75, %76 : vector<8x512xi32>
      %78 = arith.andi %48, %77 : vector<8x512xi1>
      %79 = arith.extui %78 : vector<8x512xi1> to vector<8x512xi32>
      %80 = arith.sitofp %79 : vector<8x512xi32> to vector<8x512xf32>
      %81 = vector.extract_strided_slice %80 {offsets = [0, 0], sizes = [8, 128], strides = [1, 1]} : vector<8x512xf32> to vector<8x128xf32>
      %82 = vector.extract_strided_slice %80 {offsets = [0, 128], sizes = [8, 128], strides = [1, 1]} : vector<8x512xf32> to vector<8x128xf32>
      %83 = arith.addf %81, %82 : vector<8x128xf32>
      %84 = vector.extract_strided_slice %80 {offsets = [0, 256], sizes = [8, 128], strides = [1, 1]} : vector<8x512xf32> to vector<8x128xf32>
      %85 = arith.addf %83, %84 : vector<8x128xf32>
      %86 = vector.extract_strided_slice %80 {offsets = [0, 384], sizes = [8, 128], strides = [1, 1]} : vector<8x512xf32> to vector<8x128xf32>
      %87 = arith.addf %85, %86 : vector<8x128xf32>
      %cst_19 = arith.constant dense<0.000000e+00> : vector<8xf32>
      %88 = vector.multi_reduction <add>, %87, %cst_19 [1] : vector<8x128xf32> to vector<8xf32>
      %89 = vector.shape_cast %88 : vector<8xf32> to vector<8x1xf32>
      %90 = arith.cmpf ole, %89, %61 : vector<8x1xf32>
      %91 = arith.select %90, %74, %arg4 : vector<8x1xi1>, vector<8x1xi32>
      %c1_i32_20 = arith.constant 1 : i32
      %92 = arith.shrui %arg5, %c1_i32_20 : i32
      scf.yield %91, %92 : vector<8x1xi32>, i32
    }
    %65 = vector.broadcast %62 : vector<1x512xi32> to vector<8x512xi32>
    %66 = vector.broadcast %64#0 : vector<8x1xi32> to vector<8x512xi32>
    %67 = arith.cmpi sle, %65, %66 : vector<8x512xi32>
    %68 = arith.andi %48, %67 : vector<8x512xi1>
    %69 = arith.ori %46, %68 : vector<8x512xi1>
    %cst_16 = arith.constant 0.000000e+00 : f32
    %70 = vector.broadcast %cst_16 : f32 to vector<8x512xf32>
    %71 = arith.select %69, %0, %70 : vector<8x512xi1>, vector<8x512xf32>
    %c0_17 = arith.constant 0 : index
    %c0_18 = arith.constant 0 : index
    %72 = vector.load %arg2[%c0_17, %c0_18] : memref<8x512xf32, #tpu.memory_space<vmem>>, vector<8x512xf32>
    tpu.vector_store %arg2[%c0_17, %c0_18], %71 {strides = array<i32>} : memref<8x512xf32, #tpu.memory_space<vmem>>, vector<8x512xf32>,
    return
  }
  func.func @transform_0(%arg0: i32) -> (i32, i32) {
    %c0_i32 = arith.constant 0 : i32
    %c0_i32_0 = arith.constant 0 : i32
    return %arg0, %c0_i32 : i32, i32
  }
  func.func @transform_1(%arg0: i32) -> (i32, i32) {
    %c0_i32 = arith.constant 0 : i32
    %c0_i32_0 = arith.constant 0 : i32
    return %arg0, %c0_i32 : i32, i32
  }
}

</mosaic_0001>

<bundles_post_ra>
// kernel: tpu_custom_call.1
= control target key start
LH: loop header
LB: loop body
LE: loop exit
PB: predicated region body
PF: predicated region fallthrough
CT: control target
= control target key end

     0   :  { %6 = vsyncpa [#allocation3], 0  ;;  %s582_s0 = inlined_call_operand.hbm [shape: f32[8,512], index: 0, kind: input, shape index: {}]   ;;  %s583_s1 = inlined_call_operand.hbm [shape: f32[8,512], index: 1, kind: output, shape index: {}]  }
   0x1   :  { %7 = vsyncpa [#allocation4], 0  ;;  %s396_s6 = smov [#allocation2]  }
   0x2   :  { %s14_s7 = sshll.u32 %s396_s6, 4  ;;  %s15_s7 = int_to_ptr.vmem [resolvable:$true] %s14_s7 }
   0x3   :  { %s312_s8 = scalar_lea.vmem %s15_s7, 512  ;;  %p317_p1 = scmp.lt.s32.totalorder %s15_s7, %s15_s7 }
   0x4   :  { %p313_p0 = scmp.ne.s32.totalorder %s15_s7, %s312_s8  ;;  %p318_p2 = scmp.lt.s32.totalorder %s312_s8, %s312_s8 }
   0x6   :  { %p319_p3 = por %p318_p2, %p317_p1 }
   0x8   :  { %p320_p4 = pnand %p319_p3, %p313_p0 }
   0xa   :  { %323 = shalt.err (!%p320_p4)
}
   0xb   :  { %17 = dma.hbm_to_vmem [thread:$0]  %s582_s0, 512, %s15_s7, [#allocation3]  }
   0xc   :  { %368 = dma.done.wait [#allocation3], 512  }
   0xd   :  { %369 = vsyncadd [#allocation3], 4294966784  ;;  %v414_v0 = vld [vmem:[#allocation2] sm:$0xff]  ;;  %v416_v1 = vld [vmem:[#allocation2 + $0x8] sm:$0xff]  ;;  %v397_v16 = vmov 0.0   ;;  %s484_s0 = smov 1073741824  }
   0xe   :  { %v418_v2 = vld [vmem:[#allocation2 + $0x10] sm:$0xff]  ;;  %v420_v3 = vld [vmem:[#allocation2 + $0x18] sm:$0xff]  ;;  %vm29_vm0 = vcmp.lt.s32.totalorder %v414_v0, 0  ;;  %vm30_vm1 = vcmp.lt.s32.totalorder %v416_v1, 0  ;;  %v33_v4 = vxor.u32 2147483647, %v414_v0 }
   0xf   :  { %vm31_vm2 = vcmp.lt.s32.totalorder %v418_v2, 0  ;;  %vm32_vm3 = vcmp.lt.s32.totalorder %v420_v3, 0  ;;  %v34_v5 = vxor.u32 2147483647, %v416_v1  ;;  %v35_v6 = vxor.u32 2147483647, %v418_v2 }
  0x10   :  { %vm41_vm4 = vcmp.eq.f32.partialorder %v414_v0, 0.0  ;;  %v36_v7 = vxor.u32 2147483647, %v420_v3  ;;  %v37_v8 = vsel %vm29_vm0, %v33_v4, %v414_v0  ;;  %vm42_vm5 = vcmp.eq.f32.partialorder %v416_v1, 0.0  ;;  %s486_s11 = smov 0  }
  0x11   :  { %vm43_vm6 = vcmp.eq.f32.partialorder %v418_v2, 0.0  ;;  %v38_v9 = vsel %vm30_vm1, %v34_v5, %v416_v1  ;;  %v39_v10 = vsel %vm31_vm2, %v35_v6, %v418_v2  ;;  %vm44_vm7 = vcmp.eq.f32.partialorder %v420_v3, 0.0 }
  0x12   :  { %v437_v11 = vsel %vm41_vm4, 0, %v37_v8  ;;  %v40_v12 = vsel %vm32_vm3, %v36_v7, %v420_v3  ;;  %v440_v13 = vsel %vm42_vm5, 0, %v38_v9  ;;  %v442_v14 = vsel %vm43_vm6, 0, %v39_v10 }
  0x13   :  { %vm49_vm8 = vcmp.ge.s32.totalorder %v437_v11, 0  ;;  %v445_v15 = vsel %vm44_vm7, 0, %v40_v12  ;;  %vm50_vm9 = vcmp.ge.s32.totalorder %v440_v13, 0  ;;  %vm51_vm10 = vcmp.ge.s32.totalorder %v442_v14, 0 }
  0x14   :  { %v235_v17 = vsel %vm49_vm8, 1.0, %v397_v16  ;;  %vm52_vm11 = vcmp.ge.s32.totalorder %v445_v15, 0  ;;  %v236_v18 = vsel %vm50_vm9, 1.0, %v397_v16  ;;  %v237_v19 = vsel %vm51_vm10, 1.0, %v397_v16 }
  0x15   :  { %v74_v20 = vand.u32 2147483647, %v445_v15  ;;  %v61_v21 = vadd.f32 %v236_v18, %v235_v17  ;;  %v70_v22 = vsel %vm52_vm11, %v445_v15, 4294967295  ;;  %v238_v23 = vsel %vm52_vm11, 1.0, %v397_v16 }
  0x16   :  { %v71_v27 = vand.u32 2147483647, %v437_v11  ;;  %v72_v28 = vand.u32 2147483647, %v440_v13  ;;  %v73_v29 = vand.u32 2147483647, %v442_v14 }
  0x17   :  { %v78_v24 = vsel %vm52_vm11, 2147483647, %v74_v20  ;;  %v62_v25 = vadd.f32 %v237_v19, %v61_v21  ;;  %v67_v30 = vsel %vm49_vm8, %v437_v11, 4294967295  ;;  %v68_v31 = vsel %vm50_vm9, %v440_v13, 4294967295 }
  0x18   :  { %v69_v32 = vsel %vm51_vm10, %v442_v14, 4294967295  ;;  %v75_v33 = vsel %vm49_vm8, 2147483647, %v71_v27  ;;  %v76_v34 = vsel %vm50_vm9, 2147483647, %v72_v28  ;;  %v376_v41 = vmov 0  }
  0x19   :  { %v63_v26 = vadd.f32 %v238_v23, %v62_v25  ;;  %v77_v35 = vsel %vm51_vm10, 2147483647, %v73_v29 }
  0x1b   :  { %64 = vadd.xlane.f32.xlu0 %v63_v26 }
  0xa4   :  { %v65_v36 = vpop.xlane.xlu0 %64 }
  0xa5   :  { %vm66_vm12 = vcmp.ge.f32.partialorder %v65_v36, 64.0 }
  0xa6   :  { %v81_v37 = vsel %vm66_vm12, %v67_v30, %v75_v33  ;;  %v82_v38 = vsel %vm66_vm12, %v68_v31, %v76_v34  ;;  %v83_v39 = vsel %vm66_vm12, %v69_v32, %v77_v35  ;;  %v84_v40 = vsel %vm66_vm12, %v70_v22, %v78_v24 }
  0xa7 LB: > { %v93_v42 = vstv %s374_s0  ;;  %s114_s0 = sshrl.u32 %s374_s0, 1   ;;  %v398_v44 = vmov 0.0   ;;  %s90_s11 = sadd.s32 1, %s382_s11   ;;  %s382_s11 = sphi %s486_s11, %s90_s11   ;;  %v378_v41 = vphi %v376_v41, %v377_v41   ;;  %s374_s0 = sphi %s484_s0, %s114_s0  }
  0xa8   : > { %v94_v43 = vor.u32 %v378_v41, %v93_v42  ;;  %p87_p5 = scmp.ge.s32.totalorder %s90_s11, 31  }
  0xa9   :  { %v139_v63 = vlaneseq (%p87_p5)  ;;  %s529_s12 = smov (%p87_p5), 256   ;;  %v388_v10 = vmov (%p87_p5), 0   ;;  %s531_s13 = smov (%p87_p5), 0  }
  0xaa   : > { %vm95_vm13 = vcmp.ge.s32.totalorder %v81_v37, %v94_v43  ;;  %vm96_vm14 = vcmp.ge.s32.totalorder %v82_v38, %v94_v43  ;;  %vm97_vm15 = vcmp.ge.s32.totalorder %v83_v39, %v94_v43  ;;  %vm98_vm0 = vcmp.ge.s32.totalorder %v84_v40, %v94_v43 }
  0xab   : > { %v239_v45 = vsel %vm95_vm13, 1.0, %v398_v44  ;;  %v240_v46 = vsel %vm96_vm14, 1.0, %v398_v44  ;;  %v241_v47 = vsel %vm97_vm15, 1.0, %v398_v44  ;;  %v242_v49 = vsel %vm98_vm0, 1.0, %v398_v44 }
  0xac   : > { %v107_v48 = vadd.f32 %v240_v46, %v239_v45  ;;  %v140_v4 = vand.u32 (%p87_p5), 127, %v139_v63 }
  0xae   : > { %v108_v50 = vadd.f32 %v241_v47, %v107_v48  ;;  %v141_v5 = vadd.s32 (%p87_p5), 128, %v140_v4  ;;  %v142_v6 = vadd.s32 (%p87_p5), 256, %v140_v4  ;;  %v143_v7 = vadd.s32 (%p87_p5), 384, %v140_v4 }
  0xb0   : > { %v109_v51 = vadd.f32 %v242_v49, %v108_v50 }
  0xb2   : > { %110 = vadd.xlane.f32.xlu0 %v109_v51 }
 0x13a   :  { %89 = sbr.rel (!%p87_p5) target bundleno = 167 (0xa7), region = 42 }
 0x13b   : > { %v111_v52 = vpop.xlane.xlu0 %110 }
 0x13c   : > { %vm112_vm1 = vcmp.ge.f32.partialorder %v111_v52, 64.0 }
 0x13d   : > { %v113_v53 = vsel %vm112_vm1, %v94_v43, %v378_v41  }
 0x13e   : > { %v377_v41 = vmov %v113_v53   ;;  %v115_v54 = vor.u32 (%p87_p5), 2147483648, %v113_v53 }
 0x140   :  { %v495_v55 = vsel %vm66_vm12, %v113_v53, %v115_v54 }
 0x141   :  { %vm117_vm2 = vcmp.gt.s32.totalorder %v437_v11, %v495_v55  ;;  %vm118_vm3 = vcmp.gt.s32.totalorder %v440_v13, %v495_v55  ;;  %vm119_vm4 = vcmp.gt.s32.totalorder %v442_v14, %v495_v55  ;;  %vm120_vm5 = vcmp.gt.s32.totalorder %v445_v15, %v495_v55 }
 0x142   :  { %vm121_vm6 = vcmp.eq.s32.totalorder %v437_v11, %v495_v55  ;;  %vm122_vm7 = vcmp.eq.s32.totalorder %v440_v13, %v495_v55  ;;  %vm123_vm8 = vcmp.eq.s32.totalorder %v442_v14, %v495_v55  ;;  %vm124_vm9 = vcmp.eq.s32.totalorder %v445_v15, %v495_v55 }
 0x143   :  { %v243_v56 = vsel %vm117_vm2, 1.0, %v397_v16  ;;  %v244_v57 = vsel %vm118_vm3, 1.0, %v397_v16  ;;  %v245_v58 = vsel %vm119_vm4, 1.0, %v397_v16  ;;  %v246_v60 = vsel %vm120_vm5, 1.0, %v397_v16 }
 0x144   :  { %v133_v59 = vadd.f32 %v244_v57, %v243_v56 }
 0x146   :  { %v134_v61 = vadd.f32 %v245_v58, %v133_v59 }
 0x148   :  { %v135_v62 = vadd.f32 %v246_v60, %v134_v61 }
 0x14a   :  { %136 = vadd.xlane.f32.xlu0 %v135_v62 }
 0x1d3   :  { %v137_v8 = vpop.xlane.xlu0 %136 }
 0x1d4   :  { %v138_v9 = vsub.f32 64.0, %v137_v8 }
 0x1d5 LB: > { %v152_v12 = vstv %s386_s12  ;;  %s177_s12 = sshrl.u32 %s386_s12, 1   ;;  %v399_v17 = vmov 0.0   ;;  %s149_s13 = sadd.s32 1, %s394_s13   ;;  %s394_s13 = sphi %s531_s13, %s149_s13   ;;  %v390_v10 = vphi %v388_v10, %v389_v10   ;;  %s386_s12 = sphi %s529_s12, %s177_s12  }
 0x1d6   : > { %v153_v16 = vor.u32 %v390_v10, %v152_v12  ;;  %p146_p6 = scmp.ge.s32.totalorder %s149_s13, 9  }
 0x1d7   :  { %s400_s14 = smov (%p146_p6), [#allocation5]  }
 0x1d8   : > { %vm154_vm10 = vcmp.le.s32.totalorder %v140_v4, %v153_v16  ;;  %vm155_vm11 = vcmp.le.s32.totalorder %v141_v5, %v153_v16  ;;  %vm156_vm12 = vcmp.le.s32.totalorder %v142_v6, %v153_v16  ;;  %vm157_vm13 = vcmp.le.s32.totalorder %v143_v7, %v153_v16  ;;  %s204_s15 = sshll.u32 (%p146_p6), %s400_s14, 4  ;;  %s205_s15 = int_to_ptr.vmem [resolvable:$true] %s204_s15 }
 0x1d9   : > { %vm158_vm14 = vmand %vm121_vm6, %vm154_vm10  ;;  %s324_s16 = scalar_lea.vmem (%p146_p6), %s205_s15, 512  ;;  %p329_p8 = scmp.lt.s32.totalorder (%p146_p6), %s205_s15, %s205_s15 }
 0x1da   : > { %vm159_vm15 = vmand %vm122_vm7, %vm155_vm11  ;;  %v247_v18 = vsel %vm158_vm14, 1.0, %v399_v17  ;;  %p325_p7 = scmp.ne.s32.totalorder (%p146_p6), %s205_s15, %s324_s16  ;;  %p330_p9 = scmp.lt.s32.totalorder (%p146_p6), %s324_s16, %s324_s16 }
 0x1db   : > { %vm160_vm0 = vmand %vm123_vm8, %vm156_vm12  ;;  %v248_v19 = vsel %vm159_vm15, 1.0, %v399_v17 }
 0x1dc   : > { %vm161_vm1 = vmand %vm124_vm9, %vm157_vm13  ;;  %v249_v20 = vsel %vm160_vm0, 1.0, %v399_v17  ;;  %v170_v21 = vadd.f32 %v248_v19, %v247_v18  ;;  %p331_p10 = por (%p146_p6), %p330_p9, %p329_p8 }
 0x1dd   : > { %v250_v22 = vsel %vm161_vm1, 1.0, %v399_v17 }
 0x1de   : > { %v171_v23 = vadd.f32 %v249_v20, %v170_v21  ;;  %p332_p11 = pnand (%p146_p6), %p331_p10, %p325_p7 }
 0x1e0   : > { %v172_v24 = vadd.f32 %v250_v22, %v171_v23 }
 0x1e2   : > { %173 = vadd.xlane.f32.xlu0 %v172_v24 }
 0x26a   :  { %148 = sbr.rel (!%p146_p6) target bundleno = 469 (0x1d5), region = 53 }
 0x26b   : > { %v174_v25 = vpop.xlane.xlu0 %173 }
 0x26c   : > { %vm175_vm10 = vcmp.le.f32.partialorder %v174_v25, %v138_v9 }
 0x26d   : > { %v176_v26 = vsel %vm175_vm10, %v153_v16, %v390_v10  }
 0x26e   : > { %v389_v10 = vmov %v176_v26   ;;  %vm178_vm11 = vcmp.le.s32.totalorder (%p146_p6), %v140_v4, %v176_v26  ;;  %vm179_vm12 = vcmp.le.s32.totalorder (%p146_p6), %v141_v5, %v176_v26  ;;  %vm180_vm15 = vcmp.le.s32.totalorder (%p146_p6), %v142_v6, %v176_v26 }
 0x26f   :  { %vm182_vm13 = vmand %vm121_vm6, %vm178_vm11  ;;  %vm181_vm10 = vcmp.le.s32.totalorder %v143_v7, %v176_v26 }
 0x270   :  { %vm186_vm14 = vmor %vm117_vm2, %vm182_vm13 }
 0x271   :  { %v190_v27 = vsel %vm186_vm14, %v414_v0, 0.0  ;;  %vm183_vm0 = vmand %vm122_vm7, %vm179_vm12 }
 0x272   :  { %194 = vst [vmem:[#allocation5] sm:$0xff] %v190_v27  ;;  %vm187_vm1 = vmor %vm118_vm3, %vm183_vm0 }
 0x273   :  { %v191_v28 = vsel %vm187_vm1, %v416_v1, 0.0  ;;  %vm184_vm6 = vmand %vm123_vm8, %vm180_vm15 }
 0x274   :  { %195 = vst [vmem:[#allocation5 + $0x8] sm:$0xff] %v191_v28  ;;  %vm188_vm2 = vmor %vm119_vm4, %vm184_vm6 }
 0x275   :  { %v192_v0 = vsel %vm188_vm2, %v418_v2, 0.0  ;;  %vm185_vm3 = vmand %vm124_vm9, %vm181_vm10 }
 0x276   :  { %196 = vst [vmem:[#allocation5 + $0x10] sm:$0xff] %v192_v0  ;;  %vm189_vm7 = vmor %vm120_vm5, %vm185_vm3 }
 0x277   :  { %v193_v1 = vsel %vm189_vm7, %v420_v3, 0.0 }
 0x278   :  { %197 = vst [vmem:[#allocation5 + $0x18] sm:$0xff] %v193_v1 }
 0x279   :  { %335 = shalt.err (!%p332_p11)
}
 0x27a   :  { %207 = dma.vmem_to_hbm [thread:$0]  %s205_s15, 512, %s583_s1, [#allocation4]  }
 0x27b   :  { %370 = dma.done.wait [#allocation4], 512  }
 0x27c   :  { %371 = vsyncadd [#allocation4], 4294966784 }
 0x27d   :  { %211 = vsyncpa [#allocation3], 1 }
 0x27e   :  { %212 = vsyncpa [#allocation4], 1 }

</bundles_post_ra>
